<compile_context>
chip_gen: v5e
topology: v5e:2x2
jax: 0.10.0
libtpu: 0.0.40
codegen_flags: <defaults>
</compile_context>

<pallas_src>
import functools
import math

import jax
import jax.numpy as jnp
import numpy as np
from jax import lax
from jax.experimental import pallas as pl
from jax.experimental.pallas import tpu as pltpu

# ---- small, module-consistent shapes ----
B = 2
CIN = 16            # in_channels
COUT = 32           # out_channels of conv_kernel / conv_search
HK = WK = 8         # template spatial; HK*WK must equal 64 (= CA / conv channels)
HS = WS = 16        # search spatial
CH = HK * WK        # 64 correlation channels
NK = HK * WK
NS = HS * WS
NVALID = (HS - 1) * (WS - 1)     # 225 valid outputs of the 2x2 'valid' conv

BN_EPS = 1e-5
HIGH = lax.Precision.HIGH

# packed weight slab layout (rows x cols), all f32, 128-lane aligned sub-blocks
SLAB_R = CH + 8                  # 72 (extra row block holds the fc1 bias row)
SLAB_C = 512
_OFF_WFC1T = 0                   # (CH, CH)  fc1 weight, stored TRANSPOSED (in x out)
_OFF_WFC2 = 128                  # (CH, CH)
_OFF_WPW = 256                   # (CH, CH)  pointwise conv weight (+BN folded)
_OFF_M = 384                     # (CIN, CIN) folded bn^2 * wk^T.ws
_OFF_WDW = 400                   # (CH, 4)   depthwise taps [w00,w01,w10,w11] (+BN)
_OFF_BFC2 = 404                  # (CH, 1)
_OFF_BPW = 405                   # (CH, 1)


def _sigmoid(x):
    # Numerically safe logistic; used by both the kernel and the reference.
    return jnp.where(x >= 0,
                     1.0 / (1.0 + jnp.exp(-x)),
                     jnp.exp(x) / (1.0 + jnp.exp(x)))


# --------------------- roll-direction probe (cached per backend) -------------
_ROLL_DIR_CACHE = {}


def _roll_dir():
    """+1 if pltpu.roll(x, s)[..., p] == x[..., p + s], -1 if == x[..., p - s]."""
    backend = jax.default_backend()
    d = _ROLL_DIR_CACHE.get(backend)
    if d is None:
        def probe(x_ref, o_ref):
            o_ref[...] = pltpu.roll(x_ref[...], 1, axis=1)

        x = lax.broadcasted_iota(jnp.float32, (8, 128), 1)
        r = pl.pallas_call(
            probe, out_shape=jax.ShapeDtypeStruct((8, 128), jnp.float32))(x)
        d = 1 if int(np.asarray(r)[0, 0]) == 1 else -1
        _ROLL_DIR_CACHE[backend] = d
    return d


def _fwd_shift(k, n):
    """Static shift s so pltpu.roll(x, s, axis=-1)[..., p] == x[..., (p+k) % n]."""
    return k % n if _roll_dir() == 1 else (n - k) % n


def _tensorcores_per_device():
    """Best-effort TC-per-device count (only used to pick batch-grid shape)."""
    try:
        kind = jax.devices()[0].device_kind.lower()
    except Exception:  # pragma: no cover - conservative fallback
        return 1
    return 2 if any(t in kind for t in ("v4", "v7", "7x")) else 1


# ------------------------------ fused kernel --------------------------------

def _fused_kernel(kf_ref, sf_ref, slab_ref, out_ref, *, nb, shifts):
    """(folded 1x1 projections) -> pixelwise xcorr -> CAModule ->
    depthwise 2x2 conv + BN + ReLU6 -> pointwise 1x1 conv + BN -> valid crop.
    Layout: channels on sublanes, flattened spatial on lanes."""
    s01, s10 = shifts

    # Carve the weights out of the single packed slab (static slices).
    wfc1t = slab_ref[0:CH, _OFF_WFC1T:_OFF_WFC1T + CH]   # (CH, CH) fc1^T
    wfc2 = slab_ref[0:CH, _OFF_WFC2:_OFF_WFC2 + CH]      # (CH, CH)
    wpw = slab_ref[0:CH, _OFF_WPW:_OFF_WPW + CH]         # (CH, CH)
    m = slab_ref[0:CIN, _OFF_M:_OFF_M + CIN]             # (CIN, CIN)
    wdw = slab_ref[0:CH, _OFF_WDW:_OFF_WDW + 4]          # (CH, 4)
    bfc2 = slab_ref[0:CH, _OFF_BFC2:_OFF_BFC2 + 1]       # (CH, 1)
    bpw = slab_ref[0:CH, _OFF_BPW:_OFF_BPW + 1]          # (CH, 1)
    bfc1 = slab_ref[CH:CH + 1, 0:CH]                     # (1, CH)

    for bb in range(nb):   # static unroll: weights stay hot across batch elems
        kf = kf_ref[bb]                                  # (CIN, NK)
        sf = sf_ref[bb]                                  # (CIN, NS)

        # xcorr with the 1x1 projections folded algebraically:
        #   feat = kproj^T @ sproj = kf^T @ (wk^T ws) @ sf   (proj biases == 0).
        msf = jnp.dot(m, sf, precision=HIGH,
                      preferred_element_type=jnp.float32)            # (CIN, NS)
        feat = lax.dot_general(kf, msf, (((0,), (0,)), ((), ())),
                               precision=HIGH,
                               preferred_element_type=jnp.float32)   # (CH, NS)

        # CAModule on VPU/XLU: avg-pool -> fc1 -> relu -> fc2 -> sigmoid.
        pooled = jnp.mean(feat, axis=1, keepdims=True)               # (CH, 1)
        h = jnp.maximum(
            jnp.sum(wfc1t * pooled, axis=0, keepdims=True) + bfc1, 0.0)  # (1, CH)
        att = _sigmoid(
            jnp.sum(wfc2 * h, axis=1, keepdims=True) + bfc2)         # (CH, 1)
        corr = feat * att                                            # (CH, NS)

        # Depthwise 2x2 'valid' conv (+folded BN) + ReLU6 via XLU lane rolls.
        # r11 is derived from r10 with a cheap extra shift-by-1 instead of a
        # third independent cross-vreg roll.
        r01 = pltpu.roll(corr, s01, axis=1)
        r10 = pltpu.roll(corr, s10, axis=1)
        r11 = pltpu.roll(r10, s01, axis=1)
        dw = (wdw[:, 0:1] * corr + wdw[:, 1:2] * r01
              + wdw[:, 2:3] * r10 + wdw[:, 3:4] * r11)
        dw = jnp.clip(dw, 0.0, 6.0)                                  # ReLU6

        # Pointwise 1x1 conv (+folded BN).
        res = jnp.dot(wpw, dw, precision=HIGH,
                      preferred_element_type=jnp.float32) + bpw      # (CH, NS)

        # Fused 'valid' crop: keep only the 15 valid columns of each of the 15
        # valid rows (row 15 / col 15 lanes hold roll wrap-around garbage).
        for i in range(HS - 1):
            out_ref[bb, :, i * (WS - 1):(i + 1) * (WS - 1)] = (
                res[:, i * WS:i * WS + (WS - 1)])


# ------------------------------ wrapper --------------------------------------

@functools.partial(jax.jit, static_argnums=(3, 4))
def _forward_jit(kernel_nchw, search_nchw, slab, shifts, nb):
    b = kernel_nchw.shape[0]
    # NCHW -> (C, H*W): pure (free) row-major reshapes, no transposes.
    kf = kernel_nchw.reshape(b, CIN, NK)
    sf = search_nchw.reshape(b, CIN, NS)

    out = pl.pallas_call(
        functools.partial(_fused_kernel, nb=nb, shifts=shifts),
        out_shape=jax.ShapeDtypeStruct((b, CH, NVALID), jnp.float32),
        grid=(b // nb,),
        in_specs=[
            pl.BlockSpec((nb, CIN, NK), lambda g: (g, 0, 0)),
            pl.BlockSpec((nb, CIN, NS), lambda g: (g, 0, 0)),
            pl.BlockSpec((SLAB_R, SLAB_C), lambda g: (0, 0)),
        ],
        out_specs=pl.BlockSpec((nb, CH, NVALID), lambda g: (g, 0, 0)),
        compiler_params=pltpu.CompilerParams(
            dimension_semantics=("parallel",)),
    )(kf, sf, slab)

    # (B, CH, 225) -> (B, CH, 15, 15) is a free (bitcast) reshape under jit.
    return out.reshape(b, CH, HS - 1, WS - 1)


def pixelwise_xcorr_forward(kernel_nchw, search_nchw, slab):
    b = kernel_nchw.shape[0]
    shifts = (_fwd_shift(1, NS), _fwd_shift(WS, NS))
    tc = _tensorcores_per_device()
    # Single-TC chips: one grid step, batch unrolled in-kernel (weights hot).
    # 2-TC chips: grid=(B,) + "parallel" so the batch can shard across cores.
    nb = b if (tc == 1 or b % tc != 0) else b // tc
    return _forward_jit(kernel_nchw, search_nchw, slab, shifts, nb)


# ------------------------- deterministic parameters -------------------------

def init_params(key):
    ks = jax.random.split(key, 8)

    def nrm(k, shape, std):
        return std * jax.random.normal(k, shape, jnp.float32)

    raw = {}
    # conv_kernel / conv_search: Conv2d(CIN, COUT, 1), normal_(0, sqrt(2/n)), bias=0
    std_proj = math.sqrt(2.0 / (1 * 1 * COUT))
    raw["wk"] = nrm(ks[0], (COUT, CIN), std_proj)
    raw["bk"] = jnp.zeros((COUT,), jnp.float32)
    raw["ws"] = nrm(ks[1], (COUT, CIN), std_proj)
    raw["bs"] = jnp.zeros((COUT,), jnp.float32)
    # CAModule fc1/fc2: Conv2d(64, 64, 1) (deterministic synthetic init)
    raw["wfc1"] = nrm(ks[2], (CH, CH), 0.05)
    raw["bfc1"] = nrm(ks[3], (CH,), 0.05)
    raw["wfc2"] = nrm(ks[4], (CH, CH), 0.05)
    raw["bfc2"] = nrm(ks[5], (CH,), 0.05)
    # depthwise Conv2d(64, 64, 2, groups=64, bias=False): weight (CH, 1, 2, 2)
    raw["wdw4"] = nrm(ks[6], (CH, 2, 2), math.sqrt(2.0 / (2 * 2 * CH)))
    # pointwise Conv2d(64, 64, 1)
    raw["wpw"] = nrm(ks[7], (CH, CH), math.sqrt(2.0 / (1 * 1 * CH)))
    raw["bpw"] = jnp.zeros((CH,), jnp.float32)

    # Eval-mode BatchNorm (gamma=1, beta=0, mean=0, var=1) folded into weights.
    bn_scale = 1.0 / math.sqrt(1.0 + BN_EPS)

    # Guard for the algebraic projection fold feat = kf^T (wk^T ws) sf: it is
    # only exact because the projection biases are exactly zero after the fold.
    assert float(np.max(np.abs(np.asarray(raw["bk"])))) == 0.0
    assert float(np.max(np.abs(np.asarray(raw["bs"])))) == 0.0

    wk64 = np.asarray(raw["wk"], np.float64)
    ws64 = np.asarray(raw["ws"], np.float64)
    m = (bn_scale * bn_scale) * (wk64.T @ ws64)           # (CIN, CIN)

    slab = np.zeros((SLAB_R, SLAB_C), np.float32)
    slab[0:CH, _OFF_WFC1T:_OFF_WFC1T + CH] = np.asarray(raw["wfc1"]).T
    slab[0:CH, _OFF_WFC2:_OFF_WFC2 + CH] = np.asarray(raw["wfc2"])
    slab[0:CH, _OFF_WPW:_OFF_WPW + CH] = np.asarray(raw["wpw"]) * bn_scale
    slab[0:CIN, _OFF_M:_OFF_M + CIN] = m.astype(np.float32)
    slab[0:CH, _OFF_WDW:_OFF_WDW + 4] = (
        np.asarray(raw["wdw4"]).reshape(CH, 4) * bn_scale)
    slab[0:CH, _OFF_BFC2] = np.asarray(raw["bfc2"])
    slab[0:CH, _OFF_BPW] = np.asarray(raw["bpw"]) * bn_scale
    slab[CH, 0:CH] = np.asarray(raw["bfc1"])
    return raw, jnp.asarray(slab)


# --------------------- pure-JAX reference (torch semantics) -----------------

def reference_forward(kernel_nchw, search_nchw, raw):
    bn_scale = 1.0 / math.sqrt(1.0 + BN_EPS)
    hp = lax.Precision.HIGHEST

    def conv1x1(x, w, bias):
        return (jnp.einsum('oc,bchw->bohw', w, x, precision=hp)
                + bias[None, :, None, None])

    k = conv1x1(kernel_nchw, raw["wk"], raw["bk"]) * bn_scale
    s = conv1x1(search_nchw, raw["ws"], raw["bs"]) * bn_scale
    b, c, _, _ = k.shape
    _, _, hs, ws = s.shape
    kmat = jnp.transpose(k.reshape(b, c, -1), (0, 2, 1))
    xmat = s.reshape(b, c, -1)
    feat = jnp.matmul(kmat, xmat, precision=hp).reshape(b, -1, hs, ws)

    pooled = jnp.mean(feat, axis=(2, 3), keepdims=True)
    h = jax.nn.relu(jnp.einsum('oc,bcij->boij', raw["wfc1"], pooled,
                               precision=hp) + raw["bfc1"][None, :, None, None])
    att = _sigmoid(jnp.einsum('oc,bcij->boij', raw["wfc2"], h,
                              precision=hp) + raw["bfc2"][None, :, None, None])
    corr = feat * att

    w4 = raw["wdw4"]
    dw = (w4[:, 0, 0][None, :, None, None] * corr[:, :, :-1, :-1]
          + w4[:, 0, 1][None, :, None, None] * corr[:, :, :-1, 1:]
          + w4[:, 1, 0][None, :, None, None] * corr[:, :, 1:, :-1]
          + w4[:, 1, 1][None, :, None, None] * corr[:, :, 1:, 1:])
    dw = jnp.clip(dw * bn_scale, 0.0, 6.0)
    out = (jnp.einsum('oc,bchw->bohw', raw["wpw"], dw, precision=hp)
           + raw["bpw"][None, :, None, None]) * bn_scale
    return out


# ---------------------------------- main -------------------------------------

if __name__ == "__main__":
    key = jax.random.PRNGKey(0)
    k_params, k_inputs = jax.random.split(key)
    raw, slab = init_params(k_params)

    kk, ksr = jax.random.split(k_inputs)
    kernel_in = jax.random.normal(kk, (B, CIN, HK, WK), jnp.float32)   # template
    search_in = jax.random.normal(ksr, (B, CIN, HS, WS), jnp.float32)  # search

    out = pixelwise_xcorr_forward(kernel_in, search_in, slab)
    out = jax.block_until_ready(out)
    assert out.shape == (B, CH, HS - 1, WS - 1), out.shape

    ref = reference_forward(kernel_in, search_in, raw)
    np.testing.assert_allclose(np.asarray(out), np.asarray(ref),
                               rtol=1e-3, atol=1e-3)
    print("KERNEL_OK")
</pallas_src>

<mosaic_0001>
module attributes {stable_mosaic.version = 11 : i64} {
  func.func @probe(%arg0: memref<8x128xf32, #tpu.memory_space<vmem>>, %arg1: memref<8x128xf32, #tpu.memory_space<vmem>>) attributes {dimension_semantics = [], scalar_prefetch = 0 : i64, scratch_operands = 0 : i64, tpu.core_type = #tpu.core_type<tc>} {
    %c0 = arith.constant 0 : index
    %c0_0 = arith.constant 0 : index
    %0 = vector.load %arg0[%c0, %c0_0] : memref<8x128xf32, #tpu.memory_space<vmem>>, vector<8x128xf32>
    %c1_i32 = arith.constant 1 : i32
    %1 = tpu.dynamic_rotate %0 by %c1_i32 dim 1 : vector<8x128xf32>, i32 -> vector<8x128xf32>
    %c0_1 = arith.constant 0 : index
    %c0_2 = arith.constant 0 : index
    %2 = vector.load %arg1[%c0_1, %c0_2] : memref<8x128xf32, #tpu.memory_space<vmem>>, vector<8x128xf32>
    tpu.vector_store %arg1[%c0_1, %c0_2], %1 {strides = array<i32>} : memref<8x128xf32, #tpu.memory_space<vmem>>, vector<8x128xf32>,
    return
  }
}

</mosaic_0001>

<bundles_post_ra>
// kernel: tpu_custom_call.1
= control target key start
LH: loop header
LB: loop body
LE: loop exit
PB: predicated region body
PF: predicated region fallthrough
CT: control target
= control target key end

     0   :  { %6 = vsyncpa [#allocation3], 0  ;;  %s118_s0 = inlined_call_operand.hbm [shape: f32[8,128], index: 0, kind: input, shape index: {}]   ;;  %s119_s1 = inlined_call_operand.hbm [shape: f32[8,128], index: 1, kind: output, shape index: {}]  }
   0x1   :  { %7 = vsyncpa [#allocation4], 0  ;;  %s13_s8 = sshll.u32 %s118_s0, 4  ;;  %s99_s9 = smov [#allocation2]   ;;  %s14_s8 = int_to_ptr.hbm [resolvable:$true] %s13_s8 }
   0x2   :  { %s15_s10 = sshll.u32 %s99_s9, 4  ;;  %s16_s10 = int_to_ptr.vmem [resolvable:$true] %s15_s10 }
   0x3   :  { %18 = dma.hbm_to_vmem [thread:$0]  %s14_s8, 128, %s16_s10, [#allocation3]  }
   0x4   :  { %95 = dma.done.wait [#allocation3], 128  }
   0x5   :  { %96 = vsyncadd [#allocation3], 4294967168  ;;  %v23_v0 = vld [vmem:[#allocation2] sm:$0xff]  ;;  %s100_s11 = smov 1   ;;  %s101_s12 = smov [#allocation5]  }
   0x6   :  { %24 = vrot.lane.b32.xlu0 %v23_v0, %s100_s11  ;;  %s32_s13 = sshll.u32 %s101_s12, 4  ;;  %s34_s16 = sshll.u32 %s119_s1, 4  ;;  %s33_s13 = int_to_ptr.vmem [resolvable:$true] %s32_s13  ;;  %s35_s16 = int_to_ptr.hbm [resolvable:$true] %s34_s16 }
  0x78   :  { %v25_v1 = vpop.permute.xlu0 %24 }
  0x79   :  { %26 = vst [vmem:[#allocation5] sm:$0xff] %v25_v1 }
  0x7a   :  { %37 = dma.vmem_to_hbm [thread:$0]  %s33_s13, 128, %s35_s16, [#allocation4]  }
  0x7b   :  { %97 = dma.done.wait [#allocation4], 128  }
  0x7c   :  { %98 = vsyncadd [#allocation4], 4294967168 }
  0x7d   :  { %42 = vsyncpa [#allocation3], 1 }
  0x7e   :  { %43 = vsyncpa [#allocation4], 1 }

</bundles_post_ra>
